<compile_context>
chip_gen: v6e
topology: v6e:2x2x1
jax: 0.10.0
libtpu: 0.0.40
codegen_flags: <defaults>
</compile_context>

<pallas_src>
import math

import jax
import jax.numpy as jnp
from jax.experimental import pallas as pl
from jax.experimental.pallas import tpu as pltpu


def _round_up(x, m):
    return ((x + m - 1) // m) * m


def _pick_tb(B):
    # Big batches: TB=256 keeps grid >= 2 so v7x can shard across both TCs
    # while amortizing the ~0.35us per-grid-step overhead.
    if B >= 512:
        return 256
    if B >= 128:
        return 128
    return B          # single full-extent tile, no pad copy needed


def _vae_kernel(x_ref, we1_ref, whead_ref, wd1_ref, wd2_ref, bias_ref,
                eps_z_ref, eps_x_ref,
                z_ref, head_ref, xhat_ref):
    H = we1_ref.shape[1]       # hidden width
    Zp = wd1_ref.shape[0]      # padded latent width (multiple of 128)
    D = x_ref.shape[1]         # flattened input width

    # Packed biases (one contiguous lane-aligned f32 buffer).
    be1 = bias_ref[:, 0:H]
    bhead = bias_ref[:, H:H + 2 * Zp]
    bd1 = bias_ref[:, H + 2 * Zp:2 * H + 2 * Zp]
    bd2 = bias_ref[:, 2 * H + 2 * Zp:2 * H + 2 * Zp + D]

    # ---------------- encoder ----------------
    x = x_ref[...].astype(jnp.bfloat16)       # f32 DMA, cast on the VPU (free)
    h = jnp.dot(x, we1_ref[...], preferred_element_type=jnp.float32)
    h = jnp.maximum(h + be1, 0.0)                                    # [TB, H] f32

    # Fused mu / log_std head: one [H, 2*Zp] matmul, lane-dense bf16 store.
    head = jnp.dot(h.astype(jnp.bfloat16), whead_ref[...],
                   preferred_element_type=jnp.float32) + bhead       # [TB, 2*Zp]
    head_ref[...] = head.astype(jnp.bfloat16)   # mu | log_std for host-side KL
    mu = head[:, :Zp]
    log_std = head[:, Zp:]

    # encoder._sample(): reparameterization trick.
    eps_z = eps_z_ref[...].astype(jnp.float32)
    z = mu + jnp.exp(log_std) * eps_z                                # [TB, Zp]
    # Padded lanes of z hold mu_pad(=0) + 1*eps; wd1 pad rows are zero so they
    # do not affect the decode; wrapper slices z[:, :z_dim].
    z_ref[...] = z.astype(jnp.bfloat16)

    # ---------------- decoder ----------------
    hd = jnp.dot(z.astype(jnp.bfloat16), wd1_ref[...],
                 preferred_element_type=jnp.float32)
    hd = jnp.maximum(hd + bd1, 0.0)                                  # [TB, H]

    x_mu = jnp.dot(hd.astype(jnp.bfloat16), wd2_ref[...],
                   preferred_element_type=jnp.float32) + bd2         # [TB, D]

    # decoder._sample(): unit-variance Gaussian around the decoded mean.
    eps_x = eps_x_ref[...].astype(jnp.float32)
    xhat_ref[...] = (x_mu + eps_x).astype(jnp.bfloat16)


def vae_forward(x_nchw, kparams, *, z_dim, rng_key):
    """Run the VAE forward pass.  x_nchw: [B, C, H, W] float32.

    Returns (z, x_hat, mu, log_std); outputs are bf16 (HBM-bound kernel)."""
    we1, whead, wd1, wd2, bias = kparams
    B = x_nchw.shape[0]
    D = math.prod(x_nchw.shape[1:])
    H = we1.shape[1]
    Zp = wd1.shape[0]

    TB = _pick_tb(B)
    B_pad = _round_up(B, TB)

    x_flat = x_nchw.reshape(B, D)             # stays f32; cast in-kernel
    if B_pad != B:
        x_flat = jnp.pad(x_flat, ((0, B_pad - B), (0, 0)))

    # Host-side Gaussian noise (bf16 halves the eps_x HBM stream).
    k_z, k_x = jax.random.split(rng_key, 2)
    eps_z = jax.random.normal(k_z, (B_pad, Zp), jnp.float32).astype(jnp.bfloat16)
    eps_x = jax.random.normal(k_x, (B_pad, D), jnp.float32).astype(jnp.bfloat16)

    grid = (B_pad // TB,)

    flops = 2 * B_pad * (D * H + H * 2 * Zp + Zp * H + H * D)
    transcendentals = B_pad * Zp                       # exp(log_std)
    bytes_accessed = (x_flat.size * 4
                      + (eps_z.size + eps_x.size) * 2
                      + (we1.size + whead.size + wd1.size + wd2.size) * 2
                      + bias.size * 4
                      + B_pad * (Zp + 2 * Zp + D) * 2)

    # TODO(synk): on v7x, consider pipeline_mode=pl.Buffered(1) on the constant
    # index_map weight specs to halve their VMEM footprint (64 MiB budget).
    z_pad, head_pad, xhat_pad = pl.pallas_call(
        _vae_kernel,
        out_shape=(
            jax.ShapeDtypeStruct((B_pad, Zp), jnp.bfloat16),
            jax.ShapeDtypeStruct((B_pad, 2 * Zp), jnp.bfloat16),
            jax.ShapeDtypeStruct((B_pad, D), jnp.bfloat16),
        ),
        grid_spec=pltpu.PrefetchScalarGridSpec(
            num_scalar_prefetch=0,
            grid=grid,
            in_specs=[
                pl.BlockSpec((TB, D), lambda i: (i, 0)),                 # x tile
                pl.BlockSpec((we1.shape[0], H), lambda i: (0, 0)),       # we1
                pl.BlockSpec((H, 2 * Zp), lambda i: (0, 0)),             # fused head
                pl.BlockSpec((Zp, H), lambda i: (0, 0)),                 # wd1
                pl.BlockSpec((H, D), lambda i: (0, 0)),                  # wd2
                pl.BlockSpec((1, bias.shape[1]), lambda i: (0, 0)),      # packed biases
                pl.BlockSpec((TB, Zp), lambda i: (i, 0)),                # eps_z tile
                pl.BlockSpec((TB, D), lambda i: (i, 0)),                 # eps_x tile
            ],
            out_specs=(
                pl.BlockSpec((TB, Zp), lambda i: (i, 0)),
                pl.BlockSpec((TB, 2 * Zp), lambda i: (i, 0)),
                pl.BlockSpec((TB, D), lambda i: (i, 0)),
            ),
        ),
        compiler_params=pltpu.CompilerParams(
            dimension_semantics=("parallel",)),
        cost_estimate=pl.CostEstimate(flops=flops,
                                      transcendentals=transcendentals,
                                      bytes_accessed=bytes_accessed),
    )(x_flat, we1, whead, wd1, wd2, bias, eps_z, eps_x)

    z = z_pad[:B, :z_dim]
    mu = head_pad[:B, :z_dim]
    log_std = head_pad[:B, Zp:Zp + z_dim]
    x_hat = xhat_pad[:B].reshape(x_nchw.shape)
    return z, x_hat, mu, log_std


def make_params(key, D, H, Z):
    """Deterministic synthetic params, nn.Linear-equivalent ([in, out] layout)."""
    ks = jax.random.split(key, 5)
    s = 0.05
    we1 = s * jax.random.normal(ks[0], (D, H), jnp.float32)
    be1 = jnp.zeros((H,), jnp.float32)
    wmu = s * jax.random.normal(ks[1], (H, Z), jnp.float32)
    bmu = jnp.zeros((Z,), jnp.float32)
    wls = s * jax.random.normal(ks[2], (H, Z), jnp.float32)
    bls = jnp.zeros((Z,), jnp.float32)
    wd1 = s * jax.random.normal(ks[3], (Z, H), jnp.float32)
    bd1 = jnp.zeros((H,), jnp.float32)
    wd2 = s * jax.random.normal(ks[4], (H, D), jnp.float32)
    bd2 = jnp.zeros((D,), jnp.float32)
    return (we1, be1, wmu, bmu, wls, bls, wd1, bd1, wd2, bd2)


def pack_params(params, z_pad=128):
    """Fuse mu/log_std head, pad latent dim to z_pad, cast weights to bf16,
    and pack all biases into one lane-aligned f32 buffer."""
    (we1, be1, wmu, bmu, wls, bls, wd1, bd1, wd2, bd2) = params
    D, H = we1.shape
    Z = wmu.shape[1]
    Zp = z_pad
    assert H % 128 == 0 and D % 128 == 0 and Zp % 128 == 0 and Z <= Zp

    # Fused + padded latent head: cols [0:Z) -> mu, [Zp:Zp+Z) -> log_std, rest 0.
    whead = jnp.zeros((H, 2 * Zp), jnp.float32)
    whead = whead.at[:, :Z].set(wmu).at[:, Zp:Zp + Z].set(wls)

    # Decoder input weight padded along latent rows with zeros.
    wd1_p = jnp.zeros((Zp, H), jnp.float32).at[:Z, :].set(wd1)

    # Packed biases: [be1 | bmu(+pad) bls(+pad) | bd1 | bd2], all lane-aligned.
    bias = jnp.zeros((1, 2 * H + 2 * Zp + D), jnp.float32)
    bias = (bias.at[0, 0:H].set(be1)
                 .at[0, H:H + Z].set(bmu)
                 .at[0, H + Zp:H + Zp + Z].set(bls)
                 .at[0, H + 2 * Zp:2 * H + 2 * Zp].set(bd1)
                 .at[0, 2 * H + 2 * Zp:].set(bd2))

    return (we1.astype(jnp.bfloat16),
            whead.astype(jnp.bfloat16),
            wd1_p.astype(jnp.bfloat16),
            wd2.astype(jnp.bfloat16),
            bias)


if __name__ == "__main__":
    key = jax.random.PRNGKey(0)
    k_x, k_p, k_eps = jax.random.split(key, 3)

    B, C, Himg, Wimg = 2, 4, 16, 16
    D = C * Himg * Wimg          # 1024
    H = 128                      # hidden width
    Z = 32                       # latent dim (prior ~ N(0, I_Z))

    x = jax.random.normal(k_x, (B, C, Himg, Wimg), jnp.float32)
    params = make_params(k_p, D, H, Z)
    kparams = pack_params(params, z_pad=128)

    # TODO(synk): loss_fn (decoder.log_prob + KL to the N(0,I) prior) is not part
    # of forward() and is left to the host-side training loop (mu/log_std are
    # returned for it).
    z, x_hat, mu, log_std = vae_forward(x, kparams, z_dim=Z, rng_key=k_eps)
    jax.block_until_ready((z, x_hat, mu, log_std))

    assert z.shape == (B, Z) and x_hat.shape == (B, C, Himg, Wimg)
    assert mu.shape == (B, Z) and log_std.shape == (B, Z)
    assert bool(jnp.all(jnp.isfinite(z.astype(jnp.float32))))
    assert bool(jnp.all(jnp.isfinite(x_hat.astype(jnp.float32))))
    assert bool(jnp.all(jnp.isfinite(mu.astype(jnp.float32))))
    assert bool(jnp.all(jnp.isfinite(log_std.astype(jnp.float32))))
    print("KERNEL_OK")
</pallas_src>

<mosaic_0001>
module attributes {stable_mosaic.version = 11 : i64} {
  func.func @_vae_kernel(%arg0: i32, %arg1: memref<2x1024xf32, #tpu.memory_space<vmem>>, %arg2: memref<1024x128xbf16, #tpu.memory_space<vmem>>, %arg3: memref<128x256xbf16, #tpu.memory_space<vmem>>, %arg4: memref<128x128xbf16, #tpu.memory_space<vmem>>, %arg5: memref<128x1024xbf16, #tpu.memory_space<vmem>>, %arg6: memref<1x1536xf32, #tpu.memory_space<vmem>>, %arg7: memref<2x128xbf16, #tpu.memory_space<vmem>>, %arg8: memref<2x1024xbf16, #tpu.memory_space<vmem>>, %arg9: memref<2x128xbf16, #tpu.memory_space<vmem>>, %arg10: memref<2x256xbf16, #tpu.memory_space<vmem>>, %arg11: memref<2x1024xbf16, #tpu.memory_space<vmem>>) attributes {dimension_semantics = [#tpu.dimension_semantics<parallel>], iteration_bounds = array<i64: 1>, scalar_prefetch = 0 : i64, scratch_operands = 0 : i64, tpu.core_type = #tpu.core_type<tc>, window_params = [{transform_indices = @transform_0, window_bounds = array<i64: 2, 1024>}, {pipeline_mode = #tpu.pipeline_mode<synchronous>, transform_indices = @transform_1, window_bounds = array<i64: 1024, 128>}, {pipeline_mode = #tpu.pipeline_mode<synchronous>, transform_indices = @transform_2, window_bounds = array<i64: 128, 256>}, {pipeline_mode = #tpu.pipeline_mode<synchronous>, transform_indices = @transform_3, window_bounds = array<i64: 128, 128>}, {pipeline_mode = #tpu.pipeline_mode<synchronous>, transform_indices = @transform_4, window_bounds = array<i64: 128, 1024>}, {pipeline_mode = #tpu.pipeline_mode<synchronous>, transform_indices = @transform_5, window_bounds = array<i64: 1, 1536>}, {transform_indices = @transform_6, window_bounds = array<i64: 2, 128>}, {transform_indices = @transform_7, window_bounds = array<i64: 2, 1024>}, {transform_indices = @transform_8, window_bounds = array<i64: 2, 128>}, {transform_indices = @transform_9, window_bounds = array<i64: 2, 256>}, {transform_indices = @transform_10, window_bounds = array<i64: 2, 1024>}]} {
    %c0 = arith.constant 0 : index
    %c0_0 = arith.constant 0 : index
    %0 = vector.load %arg6[%c0, %c0_0] : memref<1x1536xf32, #tpu.memory_space<vmem>>, vector<1x128xf32>
    %c0_1 = arith.constant 0 : index
    %c128 = arith.constant 128 : index
    %1 = vector.load %arg6[%c0_1, %c128] : memref<1x1536xf32, #tpu.memory_space<vmem>>, vector<1x256xf32>
    %c0_2 = arith.constant 0 : index
    %c384 = arith.constant 384 : index
    %2 = vector.load %arg6[%c0_2, %c384] : memref<1x1536xf32, #tpu.memory_space<vmem>>, vector<1x128xf32>
    %c0_3 = arith.constant 0 : index
    %c512 = arith.constant 512 : index
    %3 = vector.load %arg6[%c0_3, %c512] : memref<1x1536xf32, #tpu.memory_space<vmem>>, vector<1x1024xf32>
    %c0_4 = arith.constant 0 : index
    %c0_5 = arith.constant 0 : index
    %4 = vector.load %arg1[%c0_4, %c0_5] : memref<2x1024xf32, #tpu.memory_space<vmem>>, vector<2x1024xf32>
    %5 = arith.truncf %4 : vector<2x1024xf32> to vector<2x1024xbf16>
    %c0_6 = arith.constant 0 : index
    %c0_7 = arith.constant 0 : index
    %6 = vector.load %arg2[%c0_6, %c0_7] : memref<1024x128xbf16, #tpu.memory_space<vmem>>, vector<1024x128xbf16>
    %cst = arith.constant dense<0.000000e+00> : vector<2x128xf32>
    %7 = tpu.matmul %5, %6, %cst {dimension_numbers = #tpu.dot_dimension_numbers<[1], [0], [0], [1], [0, 0, 1, 1], [], []>} : vector<2x1024xbf16>, vector<1024x128xbf16>, vector<2x128xf32> -> vector<2x128xf32>
    %8 = vector.broadcast %0 : vector<1x128xf32> to vector<2x128xf32>
    %9 = arith.addf %7, %8 : vector<2x128xf32>
    %cst_8 = arith.constant 0.000000e+00 : f32
    %10 = vector.broadcast %cst_8 : f32 to vector<2x128xf32>
    %11 = arith.maximumf %9, %10 : vector<2x128xf32>
    %12 = arith.truncf %11 : vector<2x128xf32> to vector<2x128xbf16>
    %c0_9 = arith.constant 0 : index
    %c0_10 = arith.constant 0 : index
    %13 = vector.load %arg3[%c0_9, %c0_10] : memref<128x256xbf16, #tpu.memory_space<vmem>>, vector<128x256xbf16>
    %cst_11 = arith.constant dense<0.000000e+00> : vector<2x256xf32>
    %14 = tpu.matmul %12, %13, %cst_11 {dimension_numbers = #tpu.dot_dimension_numbers<[1], [0], [0], [1], [0, 0, 1, 1], [], []>} : vector<2x128xbf16>, vector<128x256xbf16>, vector<2x256xf32> -> vector<2x256xf32>
    %15 = vector.broadcast %1 : vector<1x256xf32> to vector<2x256xf32>
    %16 = arith.addf %14, %15 : vector<2x256xf32>
    %17 = arith.truncf %16 : vector<2x256xf32> to vector<2x256xbf16>
    %c0_12 = arith.constant 0 : index
    %c0_13 = arith.constant 0 : index
    %18 = vector.load %arg10[%c0_12, %c0_13] : memref<2x256xbf16, #tpu.memory_space<vmem>>, vector<2x256xbf16>
    tpu.vector_store %arg10[%c0_12, %c0_13], %17 {strides = array<i32>} : memref<2x256xbf16, #tpu.memory_space<vmem>>, vector<2x256xbf16>,
    %19 = vector.extract_strided_slice %16 {offsets = [0, 0], sizes = [2, 128], strides = [1, 1]} : vector<2x256xf32> to vector<2x128xf32>
    %20 = vector.extract_strided_slice %16 {offsets = [0, 128], sizes = [2, 128], strides = [1, 1]} : vector<2x256xf32> to vector<2x128xf32>
    %c0_14 = arith.constant 0 : index
    %c0_15 = arith.constant 0 : index
    %21 = vector.load %arg7[%c0_14, %c0_15] : memref<2x128xbf16, #tpu.memory_space<vmem>>, vector<2x128xbf16>
    %22 = arith.extf %21 : vector<2x128xbf16> to vector<2x128xf32>
    %23 = math.exp %20 : vector<2x128xf32>
    %24 = arith.mulf %23, %22 : vector<2x128xf32>
    %25 = arith.addf %19, %24 : vector<2x128xf32>
    %26 = arith.truncf %25 : vector<2x128xf32> to vector<2x128xbf16>
    %c0_16 = arith.constant 0 : index
    %c0_17 = arith.constant 0 : index
    %27 = vector.load %arg9[%c0_16, %c0_17] : memref<2x128xbf16, #tpu.memory_space<vmem>>, vector<2x128xbf16>
    tpu.vector_store %arg9[%c0_16, %c0_17], %26 {strides = array<i32>} : memref<2x128xbf16, #tpu.memory_space<vmem>>, vector<2x128xbf16>,
    %28 = arith.truncf %25 : vector<2x128xf32> to vector<2x128xbf16>
    %c0_18 = arith.constant 0 : index
    %c0_19 = arith.constant 0 : index
    %29 = vector.load %arg4[%c0_18, %c0_19] : memref<128x128xbf16, #tpu.memory_space<vmem>>, vector<128x128xbf16>
    %cst_20 = arith.constant dense<0.000000e+00> : vector<2x128xf32>
    %30 = tpu.matmul %28, %29, %cst_20 {dimension_numbers = #tpu.dot_dimension_numbers<[1], [0], [0], [1], [0, 0, 1, 1], [], []>} : vector<2x128xbf16>, vector<128x128xbf16>, vector<2x128xf32> -> vector<2x128xf32>
    %31 = vector.broadcast %2 : vector<1x128xf32> to vector<2x128xf32>
    %32 = arith.addf %30, %31 : vector<2x128xf32>
    %cst_21 = arith.constant 0.000000e+00 : f32
    %33 = vector.broadcast %cst_21 : f32 to vector<2x128xf32>
    %34 = arith.maximumf %32, %33 : vector<2x128xf32>
    %35 = arith.truncf %34 : vector<2x128xf32> to vector<2x128xbf16>
    %c0_22 = arith.constant 0 : index
    %c0_23 = arith.constant 0 : index
    %36 = vector.load %arg5[%c0_22, %c0_23] : memref<128x1024xbf16, #tpu.memory_space<vmem>>, vector<128x1024xbf16>
    %cst_24 = arith.constant dense<0.000000e+00> : vector<2x1024xf32>
    %37 = tpu.matmul %35, %36, %cst_24 {dimension_numbers = #tpu.dot_dimension_numbers<[1], [0], [0], [1], [0, 0, 1, 1], [], []>} : vector<2x128xbf16>, vector<128x1024xbf16>, vector<2x1024xf32> -> vector<2x1024xf32>
    %38 = vector.broadcast %3 : vector<1x1024xf32> to vector<2x1024xf32>
    %39 = arith.addf %37, %38 : vector<2x1024xf32>
    %c0_25 = arith.constant 0 : index
    %c0_26 = arith.constant 0 : index
    %40 = vector.load %arg8[%c0_25, %c0_26] : memref<2x1024xbf16, #tpu.memory_space<vmem>>, vector<2x1024xbf16>
    %41 = arith.extf %40 : vector<2x1024xbf16> to vector<2x1024xf32>
    %42 = arith.addf %39, %41 : vector<2x1024xf32>
    %43 = arith.truncf %42 : vector<2x1024xf32> to vector<2x1024xbf16>
    %c0_27 = arith.constant 0 : index
    %c0_28 = arith.constant 0 : index
    %44 = vector.load %arg11[%c0_27, %c0_28] : memref<2x1024xbf16, #tpu.memory_space<vmem>>, vector<2x1024xbf16>
    tpu.vector_store %arg11[%c0_27, %c0_28], %43 {strides = array<i32>} : memref<2x1024xbf16, #tpu.memory_space<vmem>>, vector<2x1024xbf16>,
    return
  }
  func.func @transform_0(%arg0: i32) -> (i32, i32) {
    %c0_i32 = arith.constant 0 : i32
    %c0_i32_0 = arith.constant 0 : i32
    return %arg0, %c0_i32 : i32, i32
  }
  func.func @transform_1(%arg0: i32) -> (i32, i32) {
    %c0_i32 = arith.constant 0 : i32
    %c0_i32_0 = arith.constant 0 : i32
    %c0_i32_1 = arith.constant 0 : i32
    return %c0_i32, %c0_i32_0 : i32, i32
  }
  func.func @transform_2(%arg0: i32) -> (i32, i32) {
    %c0_i32 = arith.constant 0 : i32
    %c0_i32_0 = arith.constant 0 : i32
    %c0_i32_1 = arith.constant 0 : i32
    return %c0_i32, %c0_i32_0 : i32, i32
  }
  func.func @transform_3(%arg0: i32) -> (i32, i32) {
    %c0_i32 = arith.constant 0 : i32
    %c0_i32_0 = arith.constant 0 : i32
    %c0_i32_1 = arith.constant 0 : i32
    return %c0_i32, %c0_i32_0 : i32, i32
  }
  func.func @transform_4(%arg0: i32) -> (i32, i32) {
    %c0_i32 = arith.constant 0 : i32
    %c0_i32_0 = arith.constant 0 : i32
    %c0_i32_1 = arith.constant 0 : i32
    return %c0_i32, %c0_i32_0 : i32, i32
  }
  func.func @transform_5(%arg0: i32) -> (i32, i32) {
    %c0_i32 = arith.constant 0 : i32
    %c0_i32_0 = arith.constant 0 : i32
    %c0_i32_1 = arith.constant 0 : i32
    return %c0_i32, %c0_i32_0 : i32, i32
  }
  func.func @transform_6(%arg0: i32) -> (i32, i32) {
    %c0_i32 = arith.constant 0 : i32
    %c0_i32_0 = arith.constant 0 : i32
    return %arg0, %c0_i32 : i32, i32
  }
  func.func @transform_7(%arg0: i32) -> (i32, i32) {
    %c0_i32 = arith.constant 0 : i32
    %c0_i32_0 = arith.constant 0 : i32
    return %arg0, %c0_i32 : i32, i32
  }
  func.func @transform_8(%arg0: i32) -> (i32, i32) {
    %c0_i32 = arith.constant 0 : i32
    %c0_i32_0 = arith.constant 0 : i32
    return %arg0, %c0_i32 : i32, i32
  }
  func.func @transform_9(%arg0: i32) -> (i32, i32) {
    %c0_i32 = arith.constant 0 : i32
    %c0_i32_0 = arith.constant 0 : i32
    return %arg0, %c0_i32 : i32, i32
  }
  func.func @transform_10(%arg0: i32) -> (i32, i32) {
    %c0_i32 = arith.constant 0 : i32
    %c0_i32_0 = arith.constant 0 : i32
    return %arg0, %c0_i32 : i32, i32
  }
}

</mosaic_0001>

<bundles_post_ra>
// kernel: tpu_custom_call.1
= control target key start
LH: loop header
LB: loop body
LE: loop exit
PB: predicated region body
PF: predicated region fallthrough
CT: control target
= control target key end

     0   :  { %16 = vsyncpa [#allocation3], 0  ;;  %s2654_s0 = inlined_call_operand.hbm [shape: f32[2,1024], index: 0, kind: input, shape index: {}]   ;;  %s2655_s1 = inlined_call_operand.hbm [shape: bf16[1024,128], index: 1, kind: input, shape index: {}]   ;;  %s2656_s2 = inlined_call_operand.hbm [shape: bf16[128,256], index: 2, kind: input, shape index: {}]   ;;  %s2657_s3 = inlined_call_operand.hbm [shape: bf16[128,128], index: 3, kind: input, shape index: {}]   ;;  %s2658_s4 = inlined_call_operand.hbm [shape: bf16[128,1024], index: 4, kind: input, shape index: {}]   ;;  %s2659_s5 = inlined_call_operand.hbm [shape: f32[1,1536], index: 5, kind: input, shape index: {}]   ;;  %s2660_s6 = inlined_call_operand.vmem [shape: bf16[2,128], index: 6, kind: input, shape index: {}]   ;;  %s2661_s7 = inlined_call_operand.vmem [shape: bf16[2,1024], index: 7, kind: input, shape index: {}]   ;;  %s2662_s8 = inlined_call_operand.hbm [shape: bf16[2,128], index: 8, kind: output, shape index: {0}]   ;;  %s2663_s9 = inlined_call_operand.hbm [shape: bf16[2,256], index: 9, kind: output, shape index: {1}]   ;;  %s2664_s10 = inlined_call_operand.hbm [shape: bf16[2,1024], index: 10, kind: output, shape index: {2}]  }
   0x1   :  { %17 = vsyncpa [#allocation6], 0 }
   0x2   :  { %18 = vsyncpa [#allocation9], 0 }
   0x3   :  { %19 = vsyncpa [#allocation12], 0 }
   0x4   :  { %20 = vsyncpa [#allocation4], 0 }
   0x5   :  { %21 = vsyncpa [#allocation15], 0  ;;  %s2485_s13 = smov [#allocation5]  }
   0x6   :  { %s37_s14 = sshll.u32 %s2485_s13, 4  ;;  %s38_s14 = int_to_ptr.vmem [resolvable:$true] %s37_s14 }
   0x7   :  { %s2301_s15 = scalar_lea.vmem %s38_s14, 8192  ;;  %p2306_p1 = scmp.lt.s32.totalorder %s38_s14, %s38_s14 }
   0x8   :  { %p2302_p0 = scmp.ne.s32.totalorder %s38_s14, %s2301_s15  ;;  %p2307_p2 = scmp.lt.s32.totalorder %s2301_s15, %s2301_s15 }
   0xa   :  { %p2308_p3 = por %p2307_p2, %p2306_p1 }
   0xc   :  { %p2309_p4 = pnand %p2308_p3, %p2302_p0 }
   0xe   :  { %2312 = shalt.err (!%p2309_p4)
}
   0xf   :  { %s2486_s16 = smov 64   ;;  %s2487_s17 = smov 4  }
  0x10   :  { %43 = dma.hbm_to_vmem [thread:$0]  %s2655_s1, 8192, %s38_s14, [#allocation6], %s2486_s16, %s2486_s16, %s2487_s17  }
  0x11   :  { %s2488_s20 = smov [#allocation8]   ;;  %s2489_s22 = smov [#allocation2]  }
  0x12   :  { %s61_s21 = sshll.u32 %s2488_s20, 4  ;;  %s28_s23 = sshll.u32 %s2489_s22, 4  ;;  %s62_s21 = int_to_ptr.vmem [resolvable:$true] %s61_s21  ;;  %s29_s23 = int_to_ptr.vmem [resolvable:$true] %s28_s23 }
  0x13   :  { %s2321_s24 = scalar_lea.vmem %s62_s21, 1024  ;;  %p2326_p6 = scmp.lt.s32.totalorder %s62_s21, %s62_s21 }
  0x14   :  { %p2322_p5 = scmp.ne.s32.totalorder %s62_s21, %s2321_s24  ;;  %p2327_p7 = scmp.lt.s32.totalorder %s2321_s24, %s2321_s24 }
  0x16   :  { %p2328_p8 = por %p2327_p7, %p2326_p6 }
  0x18   :  { %p2329_p9 = pnand %p2328_p8, %p2322_p5 }
  0x1a   :  { %2332 = shalt.err (!%p2329_p9)
}
  0x1b   :  { %67 = dma.hbm_to_vmem [thread:$0]  %s2657_s3, 1024, %s62_s21, [#allocation9], %s2486_s16, %s2486_s16, %s2487_s17  }
  0x1c   :  { %s2341_s27 = scalar_lea.vmem %s29_s23, 256  ;;  %p2346_p11 = scmp.lt.s32.totalorder %s29_s23, %s29_s23 }
  0x1d   :  { %p2342_p10 = scmp.ne.s32.totalorder %s29_s23, %s2341_s27  ;;  %p2347_p12 = scmp.lt.s32.totalorder %s2341_s27, %s2341_s27 }
  0x1f   :  { %p2348_p13 = por %p2347_p12, %p2346_p11 }
  0x21   :  { %p2349_p0 = pnand %p2348_p13, %p2342_p10 }
  0x23   :  { %2352 = shalt.err (!%p2349_p0)
}
  0x24   :  { %31 = dma.hbm_to_vmem [thread:$0]  %s2654_s0, 256, %s29_s23, [#allocation3]  }
  0x25   :  { %s2490_s29 = smov [#allocation7]  }
  0x26   :  { %s49_s30 = sshll.u32 %s2490_s29, 4  ;;  %s50_s30 = int_to_ptr.vmem [resolvable:$true] %s49_s30 }
  0x27   :  { %s2361_s11 = scalar_lea.vmem %s50_s30, 2048  ;;  %p2366_p2 = scmp.lt.s32.totalorder %s50_s30, %s50_s30 }
  0x28   :  { %p2362_p1 = scmp.ne.s32.totalorder %s50_s30, %s2361_s11  ;;  %p2367_p3 = scmp.lt.s32.totalorder %s2361_s11, %s2361_s11 }
  0x2a   :  { %p2368_p4 = por %p2367_p3, %p2366_p2 }
  0x2c   :  { %p2369_p5 = pnand %p2368_p4, %p2362_p1 }
  0x2e   :  { %2372 = shalt.err (!%p2369_p5)
}
  0x2f   :  { %s2491_s3 = smov 128   ;;  %s2492_s12 = smov 8  }
  0x30   :  { %55 = dma.hbm_to_vmem [thread:$0]  %s2656_s2, 2048, %s50_s30, [#allocation6], %s2491_s3, %s2491_s3, %s2492_s12  }
  0x31   :  { %s2493_s15 = smov [#allocation10]  }
  0x32   :  { %s73_s16 = sshll.u32 %s2493_s15, 4  ;;  %s74_s16 = int_to_ptr.vmem [resolvable:$true] %s73_s16 }
  0x33   :  { %s2381_s0 = scalar_lea.vmem %s74_s16, 8192  ;;  %p2386_p7 = scmp.lt.s32.totalorder %s74_s16, %s74_s16 }
  0x34   :  { %p2382_p6 = scmp.ne.s32.totalorder %s74_s16, %s2381_s0  ;;  %p2387_p8 = scmp.lt.s32.totalorder %s2381_s0, %s2381_s0 }
  0x36   :  { %p2388_p9 = por %p2387_p8, %p2386_p7 }
  0x38   :  { %p2389_p10 = pnand %p2388_p9, %p2382_p6 }
  0x3a   :  { %2392 = shalt.err (!%p2389_p10)
}
  0x3b   :  { %s2494_s17 = smov 512   ;;  %s2495_s18 = smov 32  }
  0x3c   :  { %79 = dma.hbm_to_vmem [thread:$0]  %s2658_s4, 8192, %s74_s16, [#allocation9], %s2494_s17, %s2494_s17, %s2495_s18  }
  0x3d   :  { %s2496_s21 = smov [#allocation11]  }
  0x3e   :  { %s86_s22 = sshll.u32 %s2496_s21, 4  ;;  %s87_s22 = int_to_ptr.vmem [resolvable:$true] %s86_s22 }
  0x3f   :  { %s2401_s2 = scalar_lea.vmem %s87_s22, 192  ;;  %p2406_p12 = scmp.lt.s32.totalorder %s87_s22, %s87_s22 }
  0x40   :  { %p2402_p11 = scmp.ne.s32.totalorder %s87_s22, %s2401_s2  ;;  %p2407_p13 = scmp.lt.s32.totalorder %s2401_s2, %s2401_s2 }
  0x42   :  { %p2408_p0 = por %p2407_p13, %p2406_p12 }
  0x44   :  { %p2409_p1 = pnand %p2408_p0, %p2402_p11 }
  0x46   :  { %2412 = shalt.err (!%p2409_p1)
}
  0x47   :  { %89 = dma.hbm_to_vmem [thread:$0]  %s2659_s5, 192, %s87_s22, [#allocation12]  }
  0x48   :  { %2473 = dma.done.wait [#allocation3], 256  }
  0x49   :  { %2474 = vsyncadd [#allocation3], 4294967040 }
  0x4a   :  { %2475 = dma.done.wait [#allocation6], 10240  }
  0x4b   :  { %2476 = vsyncadd [#allocation6], 4294957056 }
  0x4c   :  { %2477 = dma.done.wait [#allocation9], 9216  }
  0x4d   :  { %2478 = vsyncadd [#allocation9], 4294958080 }
  0x4e   :  { %2479 = dma.done.wait [#allocation12], 192  }
  0x4f   :  { %2480 = vsyncadd [#allocation12], 4294967104  ;;  %v2193_v0 = vld [vmem:[#allocation5 + $0x78] sm:$0xff]   ;;  %v2197_v4 = vld [vmem:[#allocation5 + $0x70] sm:$0xff]   ;;  %v2497_v22 = vmov 1983009808   ;;  %v125_v24 = vlaneseq }
  0x50   :  { %v2194_v1 = vld [vmem:[#allocation5 + $0xf8] sm:$0xff]   ;;  %2056 = vmatprep.subr.bf16.mxu0 %v2193_v0  ;;  %v2198_v5 = vld [vmem:[#allocation5 + $0xf0] sm:$0xff]   ;;  %v2201_v8 = vld [vmem:[#allocation5 + $0x68] sm:$0xff]   ;;  %v123_v23 = vunpack.c.l.s4 %v2497_v22  ;;  %vm2500_vm0 = vmmov 0   ;;  %s2503_s26 = smov [#allocation13]  }
  0x51   :  { %v2195_v2 = vld [vmem:[#allocation5 + $0x38] sm:$0xff]   ;;  %2078 = vmatprep.subr.bf16.mxu1 %v2194_v1  ;;  %v2199_v6 = vld [vmem:[#allocation5 + $0x30] sm:$0xff]   ;;  %v2202_v9 = vld [vmem:[#allocation5 + $0xe8] sm:$0xff]   ;;  %v2578_v30 = vshrl.u32 %v125_v24, 7  ;;  %s1857_s27 = sshll.u32 %s2503_s26, 4  ;;  %s1858_s27 = int_to_ptr.vmem [resolvable:$true] %s1857_s27 }
  0x52   :  { %v2196_v3 = vld [vmem:[#allocation5 + $0xb8] sm:$0xff]   ;;  %2057 = vmatpush3.bf16.msra.mxu0 %v2195_v2  ;;  %v2200_v7 = vld [vmem:[#allocation5 + $0xb0] sm:$0xff]   ;;  %v2203_v10 = vld [vmem:[#allocation5 + $0x28] sm:$0xff]   ;;  %v124_v29 = vunpack.c.0.s8 %v123_v23 }
  0x53   :  { %2079 = vmatpush3.bf16.msra.mxu1 %v2196_v3  ;;  %2058 = vmatprep.subr.bf16.mxu0 %v2197_v4  ;;  %v2204_v11 = vld [vmem:[#allocation5 + $0xa8] sm:$0xff]   ;;  %v2205_v12 = vld [vmem:[#allocation5 + $0x60] sm:$0xff]   ;;  %v2209_v16 = vld [vmem:[#allocation5 + $0x58] sm:$0xff]  }
  0x54   :  { %2080 = vmatprep.subr.bf16.mxu1 %v2198_v5  ;;  %v2206_v13 = vld [vmem:[#allocation5 + $0xe0] sm:$0xff]   ;;  %v2210_v17 = vld [vmem:[#allocation5 + $0xd8] sm:$0xff]   ;;  %v2213_v20 = vld [vmem:[#allocation5 + $0x50] sm:$0xff]   ;;  %v2581_v35 = vsub.s32 %v124_v29, %v2578_v30 }
  0x55   :  { %v2207_v14 = vld [vmem:[#allocation5 + $0x20] sm:$0xff]   ;;  %v2211_v18 = vld [vmem:[#allocation5 + $0x18] sm:$0xff]   ;;  %v2214_v21 = vld [vmem:[#allocation5 + $0xd0] sm:$0xff]  }
  0x56   :  { %2059 = vmatpush3.bf16.msra.mxu0 %v2199_v6  ;;  %v2208_v15 = vld [vmem:[#allocation5 + $0xa0] sm:$0xff]   ;;  %v2212_v19 = vld [vmem:[#allocation5 + $0x98] sm:$0xff]   ;;  %v2215_v25 = vld [vmem:[#allocation5 + $0x10] sm:$0xff]  }
  0x57   :  { %2081 = vmatpush3.bf16.msra.mxu1 %v2200_v7  ;;  %2060 = vmatprep.subr.bf16.mxu0 %v2201_v8  ;;  %v2216_v26 = vld [vmem:[#allocation5 + $0x90] sm:$0xff]   ;;  %v2217_v27 = vld [vmem:[#allocation5 + $0x48] sm:$0xff]   ;;  %v2221_v33 = vld [vmem:[#allocation5 + $0x40] sm:$0xff]  }
  0x58   :  { %2082 = vmatprep.subr.bf16.mxu1 %v2202_v9  ;;  %v2218_v28 = vld [vmem:[#allocation5 + $0xc8] sm:$0xff]   ;;  %v2222_v34 = vld [vmem:[#allocation5 + $0xc0] sm:$0xff]   ;;  %v117_v38 = vld [vmem:[#allocation2] sm:$0xff] }
  0x59   :  { %v2219_v31 = vld [vmem:[#allocation5 + $0x8] sm:$0xff]   ;;  %v2223_v36 = vld [vmem:[#allocation5] sm:$0xff]   ;;  %v128_v39 = vrot.slane %v117_v38, %v2581_v35  ;;  %v121_v40 = vcombine.high %v117_v38, %v117_v38  ;;  %v2226_v41 = vld [vmem:[#allocation5 + $0x178] sm:$0xff]  }
  0x5a   :  { %2061 = vmatpush3.bf16.msra.mxu0 %v2203_v10  ;;  %v2220_v32 = vld [vmem:[#allocation5 + $0x88] sm:$0xff]   ;;  %v2224_v37 = vld [vmem:[#allocation5 + $0x80] sm:$0xff]   ;;  %v2227_v42 = vld [vmem:[#allocation5 + $0x1f8] sm:$0xff]  }
  0x5b   :  { %2083 = vmatpush3.bf16.msra.mxu1 %v2204_v11  ;;  %2062 = vmatprep.subr.bf16.mxu0 %v2205_v12  ;;  %v136_v43 = vcombine.high %v128_v39, %v128_v39  ;;  %v135_v44 = vrot.slane %v121_v40, %v2581_v35  ;;  %v163_v45 = vpack.c.bf16 %v128_v39, %v128_v39  ;;  %v2228_v46 = vld [vmem:[#allocation5 + $0x138] sm:$0xff]   ;;  %v2230_v51 = vld [vmem:[#allocation5 + $0x170] sm:$0xff]   ;;  %v2234_v56 = vld [vmem:[#allocation5 + $0x168] sm:$0xff]  }
  0x5c   :  { %2084 = vmatprep.subr.bf16.mxu1 %v2206_v13  ;;  %v2229_v49 = vld [vmem:[#allocation5 + $0x1b8] sm:$0xff]   ;;  %v2231_v53 = vld [vmem:[#allocation5 + $0x1f0] sm:$0xff]   ;;  %v2235_v57 = vld [vmem:[#allocation5 + $0x1e8] sm:$0xff]  }
  0x5d   :  { %v164_v47 = vpack.c.bf16 %v136_v43, %v136_v43  ;;  %v137_v48 = vcombine.high %v135_v44, %v135_v44  ;;  %v165_v50 = vpack.c.bf16 %v135_v44, %v135_v44  ;;  %v2232_v54 = vld [vmem:[#allocation5 + $0x130] sm:$0xff]   ;;  %v2236_v58 = vld [vmem:[#allocation5 + $0x128] sm:$0xff]   ;;  %v2238_v60 = vld [vmem:[#allocation5 + $0x160] sm:$0xff]   ;;  %v2498_v44 = vmov 0  }
  0x5e   :  { %2063 = vmatpush3.bf16.msra.mxu0 %v2207_v14  ;;  %v2233_v55 = vld [vmem:[#allocation5 + $0x1b0] sm:$0xff]   ;;  %v2237_v59 = vld [vmem:[#allocation5 + $0x1a8] sm:$0xff]   ;;  %v2239_v61 = vld [vmem:[#allocation5 + $0x1e0] sm:$0xff]  }
  0x5f   :  { %2085 = vmatpush3.bf16.msra.mxu1 %v2208_v15  ;;  %2064 = vmatprep.subr.bf16.mxu0 %v2209_v16  ;;  %v166_v52 = vpack.c.bf16 %v137_v48, %v137_v48  ;;  %v2240_v62 = vld [vmem:[#allocation5 + $0x120] sm:$0xff]   ;;  %v2242_v0 = vld [vmem:[#allocation5 + $0x158] sm:$0xff]   ;;  %v2246_v4 = vld [vmem:[#allocation5 + $0x150] sm:$0xff]  }
  0x60   :  { %2086 = vmatprep.subr.bf16.mxu1 %v2210_v17  ;;  %721 = vmatprep.mubr.bf16.mxu0 %v164_v47  ;;  %v2241_v63 = vld [vmem:[#allocation5 + $0x1a0] sm:$0xff]   ;;  %v2243_v1 = vld [vmem:[#allocation5 + $0x1d8] sm:$0xff]   ;;  %v2247_v5 = vld [vmem:[#allocation5 + $0x1d0] sm:$0xff]  }
  0x61   :  { %761 = vmatprep.mubr.bf16.mxu1 %v166_v52  ;;  %v2244_v2 = vld [vmem:[#allocation5 + $0x118] sm:$0xff]   ;;  %v2248_v6 = vld [vmem:[#allocation5 + $0x110] sm:$0xff]   ;;  %v2250_v8 = vld [vmem:[#allocation5 + $0x148] sm:$0xff]  }
  0x62   :  { %2065 = vmatpush3.bf16.msra.mxu0 %v2211_v18  ;;  %v2245_v3 = vld [vmem:[#allocation5 + $0x198] sm:$0xff]   ;;  %v2249_v7 = vld [vmem:[#allocation5 + $0x190] sm:$0xff]   ;;  %v2251_v9 = vld [vmem:[#allocation5 + $0x1c8] sm:$0xff]  }
  0x63   :  { %2087 = vmatpush3.bf16.msra.mxu1 %v2212_v19  ;;  %2066 = vmatprep.subr.bf16.mxu0 %v2213_v20  ;;  %v2252_v10 = vld [vmem:[#allocation5 + $0x108] sm:$0xff]   ;;  %v2254_v12 = vld [vmem:[#allocation5 + $0x140] sm:$0xff]   ;;  %v118_v15 = vld [vmem:[#allocation2 + $0x8] sm:$0xff] }
  0x64   :  { %2088 = vmatprep.subr.bf16.mxu1 %v2214_v21  ;;  %v2253_v11 = vld [vmem:[#allocation5 + $0x188] sm:$0xff]   ;;  %v2255_v13 = vld [vmem:[#allocation5 + $0x1c0] sm:$0xff]   ;;  %v145_v17 = vrot.slane %v118_v15, %v2581_v35  ;;  %v138_v18 = vcombine.high %v118_v15, %v118_v15  ;;  %v2279_v40 = vld [vmem:[#allocation7 + $0x14] ss:$8 sps:$4 sm:$0xff]  }
  0x65   :  { %v2256_v14 = vld [vmem:[#allocation5 + $0x100] sm:$0xff]   ;;  %v2289_v15 = vld [vmem:[#allocation8 + $0x8] sm:$0xff]  }
  0x66   :  { %2067 = vmatpush3.bf16.msra.mxu0 %v2215_v25  ;;  %v2257_v16 = vld [vmem:[#allocation5 + $0x180] sm:$0xff]   ;;  %v153_v19 = vcombine.high %v145_v17, %v145_v17  ;;  %v152_v20 = vrot.slane %v138_v18, %v2581_v35  ;;  %v167_v21 = vpack.c.bf16 %v145_v17, %v145_v17 }
  0x67   :  { %2089 = vmatpush3.bf16.msra.mxu1 %v2216_v26  ;;  %2068 = vmatprep.subr.bf16.mxu0 %v2217_v27  ;;  %v2259_v26 = vld [vmem:[#allocation7 + $0x70] ss:$8 sps:$4 sm:$0xff]   ;;  %v2261_v27 = vld [vmem:[#allocation7 + $0x74] ss:$8 sps:$4 sm:$0xff]   ;;  %v2262_v29 = vld [vmem:[#allocation7 + $0x60] ss:$8 sps:$4 sm:$0xff]  }
  0x68   :  { %2090 = vmatprep.subr.bf16.mxu1 %v2218_v28  ;;  %v168_v22 = vpack.c.bf16 %v153_v19, %v153_v19  ;;  %v154_v23 = vcombine.high %v152_v20, %v152_v20  ;;  %v169_v24 = vpack.c.bf16 %v152_v20, %v152_v20  ;;  %v2264_v28 = vld [vmem:[#allocation7 + $0x64] ss:$8 sps:$4 sm:$0xff]   ;;  %v2274_v39 = vld [vmem:[#allocation7 + $0x20] ss:$8 sps:$4 sm:$0xff]  }
  0x69   :  { %v2276_v38 = vld [vmem:[#allocation7 + $0x24] ss:$8 sps:$4 sm:$0xff]   ;;  %v2280_v43 = vld [vmem:[#allocation7] ss:$8 sps:$4 sm:$0xff]  }
  0x6a   :  { %2069 = vmatpush3.bf16.msra.mxu0 %v2219_v31  ;;  %v170_v25 = vpack.c.bf16 %v154_v23, %v154_v23  ;;  %v2267_v31 = vld [vmem:[#allocation7 + $0x54] ss:$8 sps:$4 sm:$0xff]   ;;  %v1196_v17 = vld [vmem:[#allocation10 + $0x1c0] sm:$0xff]  ;;  %v2589_v19 = vld [vmem:[#allocation10 + $0x1c8] sm:$0xff] }
  0x6b   :  { %2091 = vmatpush3.bf16.msra.mxu1 %v2220_v32  ;;  %2070 = vmatprep.subr.bf16.mxu0 %v2221_v33  ;;  %v2265_v32 = vld [vmem:[#allocation7 + $0x50] ss:$8 sps:$4 sm:$0xff]   ;;  %v2270_v33 = vld [vmem:[#allocation7 + $0x44] ss:$8 sps:$4 sm:$0xff]  }
  0x6c   :  { %2092 = vmatprep.subr.bf16.mxu1 %v2222_v34  ;;  %v2268_v34 = vld [vmem:[#allocation7 + $0x40] ss:$8 sps:$4 sm:$0xff]  }
  0x6d   :  { %v1200_v18 = vld [vmem:[#allocation10 + $0x1e0] sm:$0xff] }
  0x6e   :  { %2071 = vmatpush3.bf16.msra.mxu0 %v2223_v36  ;;  %v2273_v36 = vld [vmem:[#allocation7 + $0x34] ss:$8 sps:$4 sm:$0xff]   ;;  %v2044_v20 = vcombine.low %v1196_v17, %v1200_v18  ;;  %v1188_v23 = vld [vmem:[#allocation10 + $0x180] sm:$0xff] }
  0x6f   :  { %2093 = vmatpush3.bf16.msra.mxu1 %v2224_v37  ;;  %2100 = vmatprep.subr.bf16.mxu0 %v2226_v41  ;;  %v2271_v37 = vld [vmem:[#allocation7 + $0x30] ss:$8 sps:$4 sm:$0xff]  }
  0x70   :  { %2122 = vmatprep.subr.bf16.mxu1 %v2227_v42  ;;  %v2277_v41 = vld [vmem:[#allocation7 + $0x10] ss:$8 sps:$4 sm:$0xff]   ;;  %v2282_v42 = vld [vmem:[#allocation7 + $0x4] ss:$8 sps:$4 sm:$0xff]  }
  0x71   :  { %722 = vmatmul.mubr.bf16.vlgmr.msra.gmra.mxu0 %v163_v45  ;;  %v2283_v45 = vld [vmem:[#allocation8 + $0x38] sm:$0xff]  }
  0x72   :  { %2101 = vmatpush3.bf16.msra.mxu0 %v2228_v46  ;;  %762 = vmatmul.mubr.bf16.vlgmr.msra.gmra.mxu1 %v165_v50  ;;  %v2499_v46 = vmov 0.0  }
  0x73   :  { %2102 = vmatprep.subr.bf16.mxu0 %v2230_v51  ;;  %2123 = vmatpush3.bf16.msra.mxu1 %v2229_v49 }
  0x74   :  { %2124 = vmatprep.subr.bf16.mxu1 %v2231_v53  ;;  %801 = vmatprep.mubr.bf16.mxu0 %v168_v22  ;;  %v2591_v22 = vld [vmem:[#allocation10 + $0x1e8] sm:$0xff] }
  0x75   :  { %841 = vmatprep.mubr.bf16.mxu1 %v170_v25  ;;  %v2046_v25 = vcombine.low %v2589_v19, %v2591_v22 }
  0x76   :  { %2103 = vmatpush3.bf16.msra.mxu0 %v2232_v54 }
  0x77   :  { %2104 = vmatprep.subr.bf16.mxu0 %v2234_v56  ;;  %2125 = vmatpush3.bf16.msra.mxu1 %v2233_v55  ;;  %v1896_v56 = vld [vmem:[#allocation11] ss:$0 sm:$0xff] }
  0x78   :  { %2126 = vmatprep.subr.bf16.mxu1 %v2235_v57 }
  0x7a   :  { %2105 = vmatpush3.bf16.msra.mxu0 %v2236_v58 }
  0x7b   :  { %2106 = vmatprep.subr.bf16.mxu0 %v2238_v60  ;;  %2127 = vmatpush3.bf16.msra.mxu1 %v2237_v59 }
  0x7c   :  { %2128 = vmatprep.subr.bf16.mxu1 %v2239_v61 }
  0x7e   :  { %2107 = vmatpush3.bf16.msra.mxu0 %v2240_v62 }
  0x7f   :  { %2108 = vmatprep.subr.bf16.mxu0 %v2242_v0  ;;  %2129 = vmatpush3.bf16.msra.mxu1 %v2241_v63 }
  0x80   :  { %2130 = vmatprep.subr.bf16.mxu1 %v2243_v1 }
  0x82   :  { %2109 = vmatpush3.bf16.msra.mxu0 %v2244_v2 }
  0x83   :  { %2110 = vmatprep.subr.bf16.mxu0 %v2246_v4  ;;  %2131 = vmatpush3.bf16.msra.mxu1 %v2245_v3 }
  0x84   :  { %2132 = vmatprep.subr.bf16.mxu1 %v2247_v5 }
  0x86   :  { %2111 = vmatpush3.bf16.msra.mxu0 %v2248_v6 }
  0x87   :  { %2112 = vmatprep.subr.bf16.mxu0 %v2250_v8  ;;  %2133 = vmatpush3.bf16.msra.mxu1 %v2249_v7 }
  0x88   :  { %2134 = vmatprep.subr.bf16.mxu1 %v2251_v9 }
  0x8a   :  { %2113 = vmatpush3.bf16.msra.mxu0 %v2252_v10  ;;  %v2284_v10 = vld [vmem:[#allocation8 + $0x30] sm:$0xff]  }
  0x8b   :  { %2114 = vmatprep.subr.bf16.mxu0 %v2254_v12  ;;  %2135 = vmatpush3.bf16.msra.mxu1 %v2253_v11  ;;  %v2285_v11 = vld [vmem:[#allocation8 + $0x28] sm:$0xff]   ;;  %v2286_v12 = vld [vmem:[#allocation8 + $0x20] sm:$0xff]  }
  0x8c   :  { %2136 = vmatprep.subr.bf16.mxu1 %v2255_v13  ;;  %v2287_v13 = vld [vmem:[#allocation8 + $0x18] sm:$0xff]  }
  0x8e   :  { %2115 = vmatpush3.bf16.msra.mxu0 %v2256_v14  ;;  %v2288_v14 = vld [vmem:[#allocation8 + $0x10] sm:$0xff]  }
  0x8f   :  { %2137 = vmatpush3.bf16.msra.mxu1 %v2257_v16  ;;  %958 = vmatprep.subr.bf16.mxu0 %v2261_v27  ;;  %v2290_v16 = vld [vmem:[#allocation8] sm:$0xff]  }
  0x90   :  { %2153 = vmatprep.subr.bf16.mxu1 %v2499_v46 }
  0x91   :  { %802 = vmatmul.mubr.bf16.vlgmr.msra.gmra.mxu0 %v167_v21  ;;  %v2045_v21 = vcombine.high %v1196_v17, %v1200_v18 }
  0x92   :  { %842 = vmatmul.mubr.bf16.vlgmr.msra.gmra.mxu1 %v169_v24  ;;  %959 = vmatpush1.bf16.msra.mxu0 %v2259_v26  ;;  %v1192_v24 = vld [vmem:[#allocation10 + $0x1a0] sm:$0xff]  ;;  %v2047_v26 = vcombine.high %v2589_v19, %v2591_v22  ;;  %v1161_v19 = vld [vmem:[#allocation10 + $0xa8] sm:$0xff] }
  0x93   :  { %960 = vmatprep.subr.bf16.mxu0 %v2264_v28  ;;  %990 = vmatprep.mubr.bf16.mxu0 %v2498_v44  ;;  %v2037_v27 = vcombine.high %v1188_v23, %v1192_v24  ;;  %v2036_v28 = vcombine.low %v1188_v23, %v1192_v24 }
  0x94   :  { %2154 = vmatpush3.bf16.msra.mxu1 %v2283_v45  ;;  %2169 = vmatprep.mubr.msk.bf16.mxu1 %vm2500_vm0, %v2499_v46  ;;  %v1160_v45 = vld [vmem:[#allocation10 + $0xa0] sm:$0xff] }
  0x95   :  { %2155 = vmatprep.subr.bf16.mxu1 %v2499_v46 }
  0x96   :  { %961 = vmatpush1.bf16.msra.mxu0 %v2262_v29  ;;  %v1180_v29 = vld [vmem:[#allocation10 + $0x140] sm:$0xff] }
  0x97   :  { %962 = vmatprep.subr.bf16.mxu0 %v2267_v31  ;;  %v1184_v31 = vld [vmem:[#allocation10 + $0x160] sm:$0xff] }
  0x98   :  { %2156 = vmatpush3.bf16.msra.mxu1 %v2284_v10  ;;  %v1189_v10 = vld [vmem:[#allocation10 + $0x188] sm:$0xff] }
  0x99   :  { %2157 = vmatprep.subr.bf16.mxu1 %v2499_v46 }
  0x9a   :  { %963 = vmatpush1.bf16.msra.mxu0 %v2265_v32  ;;  %v2029_v32 = vcombine.high %v1180_v29, %v1184_v31 }
  0x9b   :  { %964 = vmatprep.subr.bf16.mxu0 %v2270_v33  ;;  %v2028_v33 = vcombine.low %v1180_v29, %v1184_v31  ;;  %v1157_v31 = vld [vmem:[#allocation10 + $0x88] sm:$0xff] }
  0x9c   :  { %2158 = vmatpush3.bf16.msra.mxu1 %v2285_v11  ;;  %v1193_v11 = vld [vmem:[#allocation10 + $0x1a8] sm:$0xff] }
  0x9d   :  { %2159 = vmatprep.subr.bf16.mxu1 %v2499_v46  ;;  %v2038_v17 = vcombine.low %v1189_v10, %v1193_v11 }
  0x9e   :  { %965 = vmatpush1.bf16.msra.mxu0 %v2268_v34  ;;  %v1172_v34 = vld [vmem:[#allocation10 + $0x100] sm:$0xff] }
  0x9f   :  { %966 = vmatprep.subr.bf16.mxu0 %v2273_v36  ;;  %v1176_v36 = vld [vmem:[#allocation10 + $0x120] sm:$0xff] }
  0xa0   :  { %2160 = vmatpush3.bf16.msra.mxu1 %v2286_v12 }
  0xa1   :  { %2161 = vmatprep.subr.bf16.mxu1 %v2499_v46 }
  0xa2   :  { %967 = vmatpush1.bf16.msra.mxu0 %v2271_v37  ;;  %v2021_v37 = vcombine.high %v1172_v34, %v1176_v36 }
  0xa3   :  { %968 = vmatprep.subr.bf16.mxu0 %v2276_v38  ;;  %v2020_v38 = vcombine.low %v1172_v34, %v1176_v36  ;;  %v2006_v34 = vcombine.low %v1157_v31, %v1161_v19 }
  0xa4   :  { %2162 = vmatpush3.bf16.msra.mxu1 %v2287_v13 }
  0xa5   :  { %2163 = vmatprep.subr.bf16.mxu1 %v2499_v46 }
  0xa6   :  { %969 = vmatpush1.bf16.msra.mxu0 %v2274_v39  ;;  %v1164_v39 = vld [vmem:[#allocation10 + $0xc0] sm:$0xff] }
  0xa7   :  { %970 = vmatprep.subr.bf16.mxu0 %v2279_v40  ;;  %v1168_v40 = vld [vmem:[#allocation10 + $0xe0] sm:$0xff] }
  0xa8   :  { %2164 = vmatpush3.bf16.msra.mxu1 %v2288_v14  ;;  %v2039_v14 = vcombine.high %v1189_v10, %v1193_v11  ;;  %v1183_v10 = vld [vmem:[#allocation10 + $0x158] sm:$0xff] }
  0xa9   :  { %2165 = vmatprep.subr.bf16.mxu1 %v2499_v46  ;;  %v1187_v11 = vld [vmem:[#allocation10 + $0x178] sm:$0xff] }
  0xaa   :  { %971 = vmatpush1.bf16.msra.mxu0 %v2277_v41  ;;  %v2013_v41 = vcombine.high %v1164_v39, %v1168_v40 }
  0xab   :  { %972 = vmatprep.subr.bf16.mxu0 %v2282_v42  ;;  %v2012_v42 = vcombine.low %v1164_v39, %v1168_v40  ;;  %v1144_v39 = vld [vmem:[#allocation10 + $0x20] sm:$0xff]  ;;  %v1141_v40 = vld [vmem:[#allocation10 + $0x8] sm:$0xff] }
  0xac   :  { %2166 = vmatpush3.bf16.msra.mxu1 %v2289_v15  ;;  %v1181_v15 = vld [vmem:[#allocation10 + $0x148] sm:$0xff] }
  0xad   :  { %2167 = vmatprep.subr.bf16.mxu1 %v2499_v46 }
  0xae   :  { %973 = vmatpush1.bf16.msra.mxu0 %v2280_v43  ;;  %v1156_v43 = vld [vmem:[#allocation10 + $0x80] sm:$0xff] }
  0xaf   :  { %1565 = vmatprep.subr.bf16.mxu0 %v2045_v21  ;;  %v2005_v46 = vcombine.high %v1156_v43, %v1160_v45  ;;  %v1177_v21 = vld [vmem:[#allocation10 + $0x128] sm:$0xff] }
  0xb0   :  { %2168 = vmatpush3.bf16.msra.mxu1 %v2290_v16  ;;  %v1185_v16 = vld [vmem:[#allocation10 + $0x168] sm:$0xff] }
  0xb1   :  { %1606 = vmatprep.subr.bf16.mxu1 %v2047_v26  ;;  %v2031_v18 = vcombine.high %v1181_v15, %v1185_v16  ;;  %v2030_v23 = vcombine.low %v1181_v15, %v1185_v16  ;;  %v1165_v26 = vld [vmem:[#allocation10 + $0xc8] sm:$0xff]  ;;  %v2035_v15 = vcombine.high %v1183_v10, %v1187_v11  ;;  %v1174_v16 = vld [vmem:[#allocation10 + $0x110] sm:$0xff] }
 0x131   :  { %v2072_v47 = vpop.f32.mrf.mxu0 }
 0x132   :  { %v2094_v48 = vpop.f32.mrf.mxu1 }
 0x133   :  { %v2073_v49 = vpop.f32.mrf.mxu0 }
 0x134   :  { %v2095_v50 = vpop.f32.mrf.mxu1  ;;  %v2074_v55 = vadd.f32 %v2073_v49, %v2072_v47  ;;  %v2004_v47 = vcombine.low %v1156_v43, %v1160_v45  ;;  %v1152_v49 = vld [vmem:[#allocation10 + $0x60] sm:$0xff] }
 0x135   :  { %v2075_v51 = vpop.f32.mrf.mxu0  ;;  %v2096_v58 = vadd.f32 %v2095_v50, %v2094_v48  ;;  %v1148_v48 = vld [vmem:[#allocation10 + $0x40] sm:$0xff] }
 0x136   :  { %v2097_v52 = vpop.f32.mrf.mxu1  ;;  %v724_v57 = vadd.f32 %v2074_v55, %v1896_v56  ;;  %v1997_v50 = vcombine.high %v1148_v48, %v1152_v49  ;;  %v1996_v51 = vcombine.low %v1148_v48, %v1152_v49  ;;  %v114_v56 = vld [vmem:[#allocation11 + $0x1] sm:$0x3]  ;;  %v1202_v48 = vld [vmem:[#allocation10 + $0x1f0] sm:$0xff]  ;;  %v1199_v49 = vld [vmem:[#allocation10 + $0x1d8] sm:$0xff] }
 0x137   :  { %v2076_v53 = vpop.f32.mrf.mxu0  ;;  %v870_v52 = vsub.s32 0, %v2578_v30 }
 0x138   :  { %v2098_v54 = vpop.f32.mrf.mxu1  ;;  %v764_v62 = vadd.f32 %v2096_v58, %v724_v57  ;;  %v874_v53 = vsub.s32 1, %v2578_v30 }
 0x139   :  { %v2501_v54 = vmov 1966171168   ;;  %v871_v57 = vrot.slane %v114_v56, %v870_v52 }
 0x13a   :  { %v1005_v55 = vunpack.c.l.s4 %v2501_v54  ;;  %v875_v58 = vrot.slane %v114_v56, %v874_v53  ;;  %v1203_v54 = vld [vmem:[#allocation10 + $0x1f8] sm:$0xff] }
 0x13b   :  { %v2051_v56 = vcombine.high %v1199_v49, %v1203_v54 }
 0x151   :  { %v2116_v59 = vpop.f32.mrf.mxu0 }
 0x152   :  { %v2138_v60 = vpop.f32.mrf.mxu1 }
 0x153   :  { %v2117_v61 = vpop.f32.mrf.mxu0 }
 0x154   :  { %v2118_v63 = vadd.f32 %v2117_v61, %v2116_v59  ;;  %v2139_v0 = vpop.f32.mrf.mxu1  ;;  %v1006_v59 = vunpack.c.0.s8 %v1005_v55  ;;  %v2050_v55 = vcombine.low %v1199_v49, %v1203_v54  ;;  %v1143_v54 = vld [vmem:[#allocation10 + $0x18] sm:$0xff] }
 0x155   :  { %v2119_v1 = vpop.f32.mrf.mxu0  ;;  %v2140_v3 = vadd.f32 %v2139_v0, %v2138_v60 }
 0x156   :  { %v804_v2 = vadd.f32 %v2118_v63, %v764_v62  ;;  %v2141_v4 = vpop.f32.mrf.mxu1  ;;  %v2604_v0 = vsub.s32 %v1006_v59, %v2578_v30 }
 0x157   :  { %v2120_v5 = vpop.f32.mrf.mxu0 }
 0x158   :  { %v844_v6 = vadd.f32 %v2140_v3, %v804_v2  ;;  %v2142_v7 = vpop.f32.mrf.mxu1 }
 0x15a   :  { %v849_v8 = vmax.f32 %v844_v6, 0.0  ;;  %v1020_v6 = vld [vmem:[%s2660_s6] sm:$0x1]  ;;  %s2502_s6 = smov [#allocation14]  }
 0x15b   :  { %v1021_v7 = vunpack.c.l.bf16 %v1020_v6  ;;  %s1867_s25 = sshll.u32 %s2502_s6, 4  ;;  %s1868_s25 = int_to_ptr.vmem [resolvable:$true] %s1867_s25 }
 0x15c   :  { %v850_v9 = vpack.c.bf16 %v849_v8, %v849_v8  ;;  %s2413_s1 = scalar_lea.vmem %s1868_s25, 32  ;;  %p2418_p3 = scmp.lt.s32.totalorder %s1868_s25, %s1868_s25 }
 0x15d   :  { %p2414_p2 = scmp.ne.s32.totalorder %s1868_s25, %s2413_s1  ;;  %p2419_p4 = scmp.lt.s32.totalorder %s2413_s1, %s2413_s1 }
 0x15e   :  { %991 = vmatmul.mubr.bf16.vlgmr.msra.gmra.mxu0 %v850_v9 }
 0x15f   :  { %1597 = vmatprep.mubr.bf16.mxu0 %v2498_v44  ;;  %1566 = vmatpush1.bf16.msra.mxu0 %v2044_v20  ;;  %v1173_v20 = vld [vmem:[#allocation10 + $0x108] sm:$0xff]  ;;  %p2420_p5 = por %p2419_p4, %p2418_p3 }
 0x160   :  { %1567 = vmatprep.subr.bf16.mxu0 %v2037_v27  ;;  %v2023_v24 = vcombine.high %v1173_v20, %v1177_v21  ;;  %v1169_v27 = vld [vmem:[#allocation10 + $0xe8] sm:$0xff] }
 0x161   :  { %v2015_v29 = vcombine.high %v1165_v26, %v1169_v27  ;;  %v2014_v22 = vcombine.low %v1165_v26, %v1169_v27  ;;  %v1166_v27 = vld [vmem:[#allocation10 + $0xd0] sm:$0xff]  ;;  %p2421_p6 = pnand %p2420_p5, %p2414_p2 }
 0x163   :  { %1568 = vmatpush1.bf16.msra.mxu0 %v2036_v28  ;;  %v2022_v28 = vcombine.low %v1173_v20, %v1177_v21  ;;  %v1179_v20 = vld [vmem:[#allocation10 + $0x138] sm:$0xff] }
 0x164   :  { %1569 = vmatprep.subr.bf16.mxu0 %v2029_v32  ;;  %v1149_v32 = vld [vmem:[#allocation10 + $0x48] sm:$0xff] }
 0x167   :  { %1570 = vmatpush1.bf16.msra.mxu0 %v2028_v33  ;;  %v1153_v33 = vld [vmem:[#allocation10 + $0x68] sm:$0xff] }
 0x168   :  { %1571 = vmatprep.subr.bf16.mxu0 %v2021_v37  ;;  %v1999_v36 = vcombine.high %v1149_v32, %v1153_v33  ;;  %v1998_v37 = vcombine.low %v1149_v32, %v1153_v33  ;;  %v1158_v32 = vld [vmem:[#allocation10 + $0x90] sm:$0xff] }
 0x169   :  { %v1162_v33 = vld [vmem:[#allocation10 + $0xb0] sm:$0xff] }
 0x16b   :  { %1572 = vmatpush1.bf16.msra.mxu0 %v2020_v38  ;;  %v1140_v38 = vld [vmem:[#allocation10] sm:$0xff] }
 0x16c   :  { %1573 = vmatprep.subr.bf16.mxu0 %v2013_v41  ;;  %v1989_v41 = vcombine.high %v1140_v38, %v1144_v39  ;;  %v1988_v43 = vcombine.low %v1140_v38, %v1144_v39  ;;  %v2009_v39 = vcombine.high %v1158_v32, %v1162_v33 }
 0x16f   :  { %1574 = vmatpush1.bf16.msra.mxu0 %v2012_v42  ;;  %v1145_v42 = vld [vmem:[#allocation10 + $0x28] sm:$0xff] }
 0x170   :  { %1575 = vmatprep.subr.bf16.mxu0 %v2005_v46  ;;  %v1990_v45 = vcombine.low %v1141_v40, %v1145_v42  ;;  %v1991_v46 = vcombine.high %v1141_v40, %v1145_v42  ;;  %v1154_v42 = vld [vmem:[#allocation10 + $0x70] sm:$0xff] }
 0x173   :  { %1576 = vmatpush1.bf16.msra.mxu0 %v2004_v47  ;;  %v1198_v47 = vld [vmem:[#allocation10 + $0x1d0] sm:$0xff] }
 0x174   :  { %1577 = vmatprep.subr.bf16.mxu0 %v1997_v50  ;;  %v2048_v50 = vcombine.low %v1198_v47, %v1202_v48 }
 0x177   :  { %1578 = vmatpush1.bf16.msra.mxu0 %v1996_v51  ;;  %v2049_v51 = vcombine.high %v1198_v47, %v1202_v48 }
 0x178   :  { %1579 = vmatprep.subr.bf16.mxu0 %v1989_v41  ;;  %v1150_v41 = vld [vmem:[#allocation10 + $0x50] sm:$0xff] }
 0x179   :  { %v2001_v48 = vcombine.high %v1150_v41, %v1154_v42 }
 0x17b   :  { %1580 = vmatpush1.bf16.msra.mxu0 %v1988_v43  ;;  %v1151_v43 = vld [vmem:[#allocation10 + $0x58] sm:$0xff] }
 0x17c   :  { %1647 = vmatprep.subr.bf16.mxu0 %v2049_v51  ;;  %v1146_v51 = vld [vmem:[#allocation10 + $0x30] sm:$0xff] }
 0x21e   :  { %v992_v60 = vpop.f32.mrf.mxu0 }
 0x21f   :  { %v993_v62 = vadd.f32 %v992_v60, %v871_v57  ;;  %v1979_v57 = vld [vmem:[#allocation11 + $0x3] ss:$0 sm:$0xff]  ;;  %v1190_v60 = vld [vmem:[#allocation10 + $0x190] sm:$0xff] }
 0x220   :  { %v994_v61 = vpop.f32.mrf.mxu0 }
 0x221   :  { %v995_v63 = vadd.f32 %v994_v61, %v875_v58 }
 0x222   :  { %v996_v1 = vpop.f32.mrf.mxu0 }
 0x223   :  { %v1977_v2 = vpack.c.bf16 %v995_v63, %v993_v62  ;;  %v1022_v3 = vmul.f32 1.442695, %v995_v63  ;;  %v1191_v63 = vld [vmem:[#allocation10 + $0x198] sm:$0xff] }
 0x224   :  { %v997_v4 = vpop.f32.mrf.mxu0  ;;  %v1195_v1 = vld [vmem:[#allocation10 + $0x1b8] sm:$0xff] }
 0x225   :  { %2291 = vpow2.f32 %v1022_v3  ;;  %v1010_v5 = vrot.slane %v1977_v2, %v2604_v0  ;;  %v2043_v6 = vcombine.high %v1191_v63, %v1195_v1 }
 0x227   :  { %1978 = vst.sshfl [vmem:[#allocation14] sm:$0x5 pattern:$0x73625140] %v1010_v5 }
 0x232   :  { %v2292_v8 = vpop.eup %2291 }
 0x233   :  { %v1024_v9 = vmul.f32 %v2292_v8, %v1021_v7  ;;  %v1182_v7 = vld [vmem:[#allocation10 + $0x150] sm:$0xff] }
 0x235   :  { %v1025_v12 = vadd.f32 %v1024_v9, %v993_v62  ;;  %v1194_v62 = vld [vmem:[#allocation10 + $0x1b0] sm:$0xff] }
 0x236   :  { %v2041_v5 = vcombine.high %v1190_v60, %v1194_v62  ;;  %v1186_v9 = vld [vmem:[#allocation10 + $0x170] sm:$0xff] }
 0x237   :  { %v1026_v13 = vpack.c.bf16 %v1025_v12, %v1025_v12  ;;  %v2040_v12 = vcombine.low %v1190_v60, %v1194_v62  ;;  %v2032_v21 = vcombine.low %v1182_v7, %v1186_v9 }
 0x239   :  { %2170 = vmatmul.mubr.bf16.vlgmr.msra.gmra.mxu1 %v1026_v13  ;;  %1027 = vst [vmem:[#allocation13] sm:$0x1] %v1026_v13  ;;  %v2042_v13 = vcombine.low %v1191_v63, %v1195_v1 }
 0x23a   :  { %1607 = vmatpush1.bf16.msra.mxu1 %v2046_v25  ;;  %1638 = vmatprep.mubr.bf16.mxu1 %v2498_v44  ;;  %v2007_v25 = vcombine.high %v1157_v31, %v1161_v19  ;;  %v1171_v31 = vld [vmem:[#allocation10 + $0xf8] sm:$0xff] }
 0x23b   :  { %1608 = vmatprep.subr.bf16.mxu1 %v2039_v14  ;;  %v2033_v14 = vcombine.high %v1182_v7, %v1186_v9 }
 0x23e   :  { %1609 = vmatpush1.bf16.msra.mxu1 %v2038_v17  ;;  %v1178_v17 = vld [vmem:[#allocation10 + $0x130] sm:$0xff] }
 0x23f   :  { %1610 = vmatprep.subr.bf16.mxu1 %v2031_v18  ;;  %v1175_v18 = vld [vmem:[#allocation10 + $0x118] sm:$0xff]  ;;  %v2024_v19 = vcombine.low %v1174_v16, %v1178_v17 }
 0x240   :  { %v2027_v26 = vcombine.high %v1175_v18, %v1179_v20 }
 0x242   :  { %1611 = vmatpush1.bf16.msra.mxu1 %v2030_v23  ;;  %v2034_v23 = vcombine.low %v1183_v10, %v1187_v11 }
 0x243   :  { %1612 = vmatprep.subr.bf16.mxu1 %v2023_v24  ;;  %v2025_v24 = vcombine.high %v1174_v16, %v1178_v17 }
 0x246   :  { %1613 = vmatpush1.bf16.msra.mxu1 %v2022_v28  ;;  %v1170_v28 = vld [vmem:[#allocation10 + $0xf0] sm:$0xff] }
 0x247   :  { %1614 = vmatprep.subr.bf16.mxu1 %v2015_v29  ;;  %v1167_v29 = vld [vmem:[#allocation10 + $0xd8] sm:$0xff] }
 0x248   :  { %v2018_v38 = vcombine.low %v1167_v29, %v1171_v31 }
 0x24a   :  { %1615 = vmatpush1.bf16.msra.mxu1 %v2014_v22  ;;  %v2026_v22 = vcombine.low %v1175_v18, %v1179_v20 }
 0x24b   :  { %1616 = vmatprep.subr.bf16.mxu1 %v2007_v25  ;;  %v2017_v25 = vcombine.high %v1166_v27, %v1170_v28 }
 0x24e   :  { %1617 = vmatpush1.bf16.msra.mxu1 %v2006_v34  ;;  %v1159_v34 = vld [vmem:[#allocation10 + $0x98] sm:$0xff] }
 0x24f   :  { %1618 = vmatprep.subr.bf16.mxu1 %v1999_v36  ;;  %v1163_v36 = vld [vmem:[#allocation10 + $0xb8] sm:$0xff] }
 0x250   :  { %v2011_v40 = vcombine.high %v1159_v34, %v1163_v36  ;;  %v2010_v47 = vcombine.low %v1159_v34, %v1163_v36 }
 0x252   :  { %1619 = vmatpush1.bf16.msra.mxu1 %v1998_v37  ;;  %v2016_v37 = vcombine.low %v1166_v27, %v1170_v28 }
 0x253   :  { %1620 = vmatprep.subr.bf16.mxu1 %v1991_v46  ;;  %v2008_v46 = vcombine.low %v1158_v32, %v1162_v33 }
 0x256   :  { %1621 = vmatpush1.bf16.msra.mxu1 %v1990_v45  ;;  %v1155_v45 = vld [vmem:[#allocation10 + $0x78] sm:$0xff] }
 0x257   :  { %1688 = vmatprep.subr.bf16.mxu1 %v2051_v56  ;;  %v2003_v49 = vcombine.high %v1151_v43, %v1155_v45  ;;  %v2000_v56 = vcombine.low %v1150_v41, %v1154_v42 }
 0x2f9   :  { %v1132_v58 = vpop.f32.mrf.mxu1 }
 0x2fa   :  { %v1133_v59 = vadd.f32 %v1979_v57, %v1132_v58  ;;  %v2002_v57 = vcombine.low %v1151_v43, %v1155_v45 }
 0x2fb   :  { %v2171_v61 = vpop.f32.mrf.mxu1 }
 0x2fc   :  { %v1138_v2 = vmax.f32 %v1133_v59, 0.0 }
 0x2fd   :  { %v1135_v3 = vpop.f32.mrf.mxu1 }
 0x2fe   :  { %v2614_v4 = vpack.c.bf16 %v1138_v2, %v1138_v2 }
 0x2ff   :  { %v2172_v8 = vpop.f32.mrf.mxu1 }
 0x300   :  { %1598 = vmatmul.mubr.bf16.vlgmr.msra.gmra.mxu0 %v2614_v4  ;;  %1639 = vmatmul.mubr.bf16.vlgmr.msra.gmra.mxu1 %v2614_v4 }
 0x301   :  { %1648 = vmatpush1.bf16.msra.mxu0 %v2048_v50  ;;  %1689 = vmatpush1.bf16.msra.mxu1 %v2050_v55  ;;  %v1142_v50 = vld [vmem:[#allocation10 + $0x10] sm:$0xff]  ;;  %v1147_v55 = vld [vmem:[#allocation10 + $0x38] sm:$0xff] }
 0x302   :  { %1649 = vmatprep.subr.bf16.mxu0 %v2041_v5  ;;  %1690 = vmatprep.subr.bf16.mxu1 %v2043_v6  ;;  %v1993_v58 = vcombine.high %v1142_v50, %v1146_v51  ;;  %v1995_v59 = vcombine.high %v1143_v54, %v1147_v55  ;;  %v1992_v60 = vcombine.low %v1142_v50, %v1146_v51 }
 0x303   :  { %1679 = vmatprep.mubr.bf16.mxu0 %v2498_v44  ;;  %1720 = vmatprep.mubr.bf16.mxu1 %v2498_v44  ;;  %v2019_v44 = vcombine.high %v1167_v29, %v1171_v31  ;;  %v1994_v61 = vcombine.low %v1143_v54, %v1147_v55 }
 0x305   :  { %1650 = vmatpush1.bf16.msra.mxu0 %v2040_v12  ;;  %1691 = vmatpush1.bf16.msra.mxu1 %v2042_v13 }
 0x306   :  { %1651 = vmatprep.subr.bf16.mxu0 %v2033_v14  ;;  %1692 = vmatprep.subr.bf16.mxu1 %v2035_v15 }
 0x309   :  { %1652 = vmatpush1.bf16.msra.mxu0 %v2032_v21  ;;  %1693 = vmatpush1.bf16.msra.mxu1 %v2034_v23 }
 0x30a   :  { %1653 = vmatprep.subr.bf16.mxu0 %v2025_v24  ;;  %1694 = vmatprep.subr.bf16.mxu1 %v2027_v26 }
 0x30d   :  { %1654 = vmatpush1.bf16.msra.mxu0 %v2024_v19  ;;  %1695 = vmatpush1.bf16.msra.mxu1 %v2026_v22 }
 0x30e   :  { %1655 = vmatprep.subr.bf16.mxu0 %v2017_v25  ;;  %1696 = vmatprep.subr.bf16.mxu1 %v2019_v44 }
 0x311   :  { %1656 = vmatpush1.bf16.msra.mxu0 %v2016_v37  ;;  %1697 = vmatpush1.bf16.msra.mxu1 %v2018_v38 }
 0x312   :  { %1657 = vmatprep.subr.bf16.mxu0 %v2009_v39  ;;  %1698 = vmatprep.subr.bf16.mxu1 %v2011_v40 }
 0x315   :  { %1658 = vmatpush1.bf16.msra.mxu0 %v2008_v46  ;;  %1699 = vmatpush1.bf16.msra.mxu1 %v2010_v47 }
 0x316   :  { %1659 = vmatprep.subr.bf16.mxu0 %v2001_v48  ;;  %1700 = vmatprep.subr.bf16.mxu1 %v2003_v49 }
 0x319   :  { %1660 = vmatpush1.bf16.msra.mxu0 %v2000_v56  ;;  %1701 = vmatpush1.bf16.msra.mxu1 %v2002_v57 }
 0x31a   :  { %1661 = vmatprep.subr.bf16.mxu0 %v1993_v58  ;;  %1702 = vmatprep.subr.bf16.mxu1 %v1995_v59 }
 0x31d   :  { %1662 = vmatpush1.bf16.msra.mxu0 %v1992_v60  ;;  %1703 = vmatpush1.bf16.msra.mxu1 %v1994_v61 }
 0x320   :  { %1680 = vmatmul.mubr.bf16.vlgmr.msra.gmra.mxu0 %v2614_v4  ;;  %1721 = vmatmul.mubr.bf16.vlgmr.msra.gmra.mxu1 %v2614_v4 }
 0x321   :  { %2424 = shalt.err (!%p2421_p6)
}
 0x322   :  { %1870 = dma.vmem_to_hbm [thread:$0]  %s1868_s25, 32, %s2663_s9, [#allocation15]  }
 0x323   :  { %s2433_s30 = scalar_lea.vmem %s1858_s27, 16  ;;  %s2437_s11 = scalar_lea.vmem %s1858_s27, 32 }
 0x324   :  { %p2434_p7 = scmp.ne.s32.totalorder %s1858_s27, %s2433_s30  ;;  %p2438_p8 = scmp.lt.s32.totalorder %s1858_s27, %s1858_s27 }
 0x325   :  { %p2439_p9 = scmp.lt.s32.totalorder %s2437_s11, %s2433_s30 }
 0x327   :  { %p2440_p10 = por %p2439_p9, %p2438_p8 }
 0x329   :  { %p2441_p11 = pnand %p2440_p10, %p2434_p7 }
 0x32b   :  { %2444 = shalt.err (!%p2441_p11)
}
 0x32c   :  { %1860 = dma.vmem_to_hbm [thread:$0]  %s1858_s27, 16, %s2662_s8, [#allocation4]   ;;  %v1729_v7 = vld [vmem:[%s2661_s7] sm:$0xff]  ;;  %v1219_v10 = vsub.s32 3, %v2578_v30  ;;  %v1215_v11 = vsub.s32 2, %v2578_v30  ;;  %v116_v12 = vld [vmem:[#allocation11 + $0x4] sm:$0xff] }
 0x32d   :  { %v1730_v8 = vunpack.c.l.bf16 %v1729_v7  ;;  %v1212_v15 = vrot.slane %v116_v12, %v874_v53  ;;  %v1731_v17 = vunpack.c.h.bf16 %v1729_v7  ;;  %v1208_v18 = vrot.slane %v116_v12, %v870_v52  ;;  %s2504_s7 = smov [#allocation16]  }
 0x32e   :  { %v1220_v16 = vrot.slane %v116_v12, %v1219_v10  ;;  %v1216_v20 = vrot.slane %v116_v12, %v1215_v11  ;;  %v1223_v27 = vsub.s32 4, %v2578_v30  ;;  %v1231_v28 = vsub.s32 6, %v2578_v30  ;;  %s1877_s8 = sshll.u32 %s2504_s7, 4  ;;  %s1878_s8 = int_to_ptr.vmem [resolvable:$true] %s1877_s8 }
 0x32f   :  { %v1734_v9 = vcombine.high %v1730_v8, %v1730_v8  ;;  %v1741_v13 = vrot.slane %v1730_v8, %v2581_v35  ;;  %v1751_v29 = vcombine.high %v1731_v17, %v1731_v17  ;;  %v1227_v22 = vsub.s32 5, %v2578_v30  ;;  %s2453_s14 = scalar_lea.vmem %s1878_s8, 128  ;;  %p2458_p13 = scmp.lt.s32.totalorder %s1878_s8, %s1878_s8 }
 0x330   :  { %v1235_v53 = vsub.s32 7, %v2578_v30  ;;  %v1224_v32 = vrot.slane %v116_v12, %v1223_v27  ;;  %v1758_v52 = vrot.slane %v1731_v17, %v2581_v35  ;;  %v1232_v33 = vrot.slane %v116_v12, %v1231_v28  ;;  %p2454_p12 = scmp.ne.s32.totalorder %s1878_s8, %s2453_s14  ;;  %p2459_p0 = scmp.lt.s32.totalorder %s2453_s14, %s2453_s14 }
 0x331   :  { %v1748_v14 = vrot.slane %v1734_v9, %v2581_v35  ;;  %v1749_v23 = vcombine.high %v1741_v13, %v1741_v13  ;;  %v1765_v34 = vrot.slane %v1751_v29, %v2581_v35  ;;  %v1228_v38 = vrot.slane %v116_v12, %v1227_v22 }
 0x332   :  { %v1236_v39 = vrot.slane %v116_v12, %v1235_v53  ;;  %v1766_v47 = vcombine.high %v1758_v52, %v1758_v52  ;;  %p2460_p1 = por %p2459_p0, %p2458_p13 }
 0x333   :  { %v1750_v26 = vcombine.high %v1748_v14, %v1748_v14  ;;  %v1767_v30 = vcombine.high %v1765_v34, %v1765_v34 }
 0x334   :  { %p2461_p2 = pnand %p2460_p1, %p2454_p12 }
 0x3c0   :  { %v1599_v62 = vpop.f32.mrf.mxu0  ;;  %v1640_v63 = vpop.f32.mrf.mxu1 }
 0x3c1   :  { %v1600_v31 = vadd.f32 %v1599_v62, %v1208_v18  ;;  %v1641_v19 = vadd.f32 %v1640_v63, %v1216_v20 }
 0x3c2   :  { %v1601_v1 = vpop.f32.mrf.mxu0  ;;  %v1642_v2 = vpop.f32.mrf.mxu1 }
 0x3c3   :  { %v1602_v21 = vadd.f32 %v1601_v1, %v1212_v15  ;;  %v1643_v24 = vadd.f32 %v1642_v2, %v1220_v16  ;;  %v1776_v36 = vadd.f32 %v1741_v13, %v1600_v31  ;;  %v1778_v37 = vadd.f32 %v1748_v14, %v1641_v19 }
 0x3c4   :  { %v1603_v3 = vpop.f32.mrf.mxu0  ;;  %v1644_v4 = vpop.f32.mrf.mxu1 }
 0x3c5   :  { %v1777_v25 = vadd.f32 %v1749_v23, %v1602_v21  ;;  %v1779_v44 = vadd.f32 %v1750_v26, %v1643_v24 }
 0x3c6   :  { %v1604_v5 = vpop.f32.mrf.mxu0  ;;  %v1645_v6 = vpop.f32.mrf.mxu1 }
 0x3c7   :  { %v2052_v40 = vpack.c.bf16 %v1777_v25, %v1776_v36  ;;  %v2053_v41 = vpack.c.bf16 %v1779_v44, %v1778_v37 }
 0x3c9   :  { %v1810_v54 = vrot.slane %v2052_v40, %v2604_v0  ;;  %v1817_v35 = vrot.slane %v2053_v41, %v2604_v0 }
 0x3cb   :  { %v1832_v2 = vcombine.low %v1810_v54, %v1817_v35 }
 0x3cd   :  { %v1840_v6 = vrot.slane %v1832_v2, %v2604_v0 }
 0x3e0   :  { %v1681_v42 = vpop.f32.mrf.mxu0  ;;  %v1722_v43 = vpop.f32.mrf.mxu1 }
 0x3e1   :  { %v1682_v45 = vadd.f32 %v1681_v42, %v1224_v32  ;;  %v1723_v46 = vadd.f32 %v1722_v43, %v1232_v33 }
 0x3e2   :  { %v1683_v48 = vpop.f32.mrf.mxu0  ;;  %v1724_v49 = vpop.f32.mrf.mxu1 }
 0x3e3   :  { %v1684_v50 = vadd.f32 %v1683_v48, %v1228_v38  ;;  %v1725_v51 = vadd.f32 %v1724_v49, %v1236_v39  ;;  %v1780_v57 = vadd.f32 %v1758_v52, %v1682_v45  ;;  %v1782_v58 = vadd.f32 %v1765_v34, %v1723_v46 }
 0x3e4   :  { %v1685_v55 = vpop.f32.mrf.mxu0  ;;  %v1726_v56 = vpop.f32.mrf.mxu1 }
 0x3e5   :  { %v1781_v59 = vadd.f32 %v1766_v47, %v1684_v50  ;;  %v1783_v60 = vadd.f32 %v1767_v30, %v1725_v51 }
 0x3e6   :  { %v1686_v61 = vpop.f32.mrf.mxu0  ;;  %v1727_v62 = vpop.f32.mrf.mxu1 }
 0x3e7   :  { %v2054_v63 = vpack.c.bf16 %v1781_v59, %v1780_v57  ;;  %v2055_v1 = vpack.c.bf16 %v1783_v60, %v1782_v58 }
 0x3e9   :  { %v1824_v3 = vrot.slane %v2054_v63, %v2604_v0  ;;  %v1831_v4 = vrot.slane %v2055_v1, %v2604_v0 }
 0x3eb   :  { %v1833_v5 = vcombine.low %v1824_v3, %v1831_v4 }
 0x3ed   :  { %v1847_v7 = vrot.slane %v1833_v5, %v2604_v0 }
 0x3ef   :  { %v1848_v8 = vcombine.low %v1840_v6, %v1847_v7 }
 0x3f1   :  { %1850 = vst [vmem:[#allocation16] sm:$0xff] %v1848_v8 }
 0x3f2   :  { %2464 = shalt.err (!%p2461_p2)
}
 0x3f3   :  { %1880 = dma.vmem_to_hbm [thread:$0]  %s1878_s8, 128, %s2664_s10, [#allocation15]  }
 0x3f4   :  { %2481 = dma.done.wait [#allocation4], 16  }
 0x3f5   :  { %2482 = vsyncadd [#allocation4], 4294967280 }
 0x3f6   :  { %2483 = dma.done.wait [#allocation15], 160  }
 0x3f7   :  { %2484 = vsyncadd [#allocation15], 4294967136 }
 0x3f8   :  { %1890 = vsyncpa [#allocation3], 1 }
 0x3f9   :  { %1891 = vsyncpa [#allocation6], 1 }
 0x3fa   :  { %1892 = vsyncpa [#allocation9], 1 }
 0x3fb   :  { %1893 = vsyncpa [#allocation12], 1 }
 0x3fc   :  { %1894 = vsyncpa [#allocation4], 1 }
 0x3fd   :  { %1895 = vsyncpa [#allocation15], 1 }

</bundles_post_ra>
